<compile_context>
chip_gen: v7x
topology: tpu7x:2x2x1
jax: 0.10.0
libtpu: 0.0.40
codegen_flags: <defaults>
</compile_context>

<pallas_src>
import functools

import jax
import jax.numpy as jnp
from jax.experimental import pallas as pl
from jax.experimental.pallas import tpu as pltpu


# ---------------------------------------------------------------------------
# Fused kernel: folded 1x1-conv affine + seg->class head accumulation.
# Grid: (batch b, spatial tile j).  Spatial positions live on the lane axis.
# ---------------------------------------------------------------------------
def _fused_kernel(x_ref, w_ref, b_ref, s2c_ref, seg_ref, cls_ref, *, hw):
    """
    x_ref   : (C, T)  VMEM  -- input pixels, spatial on lanes
    w_ref   : (C, 2)  SMEM  -- folded 1x1-conv weight  (W1 @ W2)
    b_ref   : (1, 2)  SMEM  -- folded bias             (b1 @ W2 + b2)
    s2c_ref : (1, 2)  SMEM  -- [w, b] of the seg->class 1x1 conv
    seg_ref : (2, T)  VMEM  -- segmentation output tile (lane-dense store)
    cls_ref : (1, 1)  VMEM  -- per-batch class accumulator (resident across j)
    """
    j = pl.program_id(1)
    nj = pl.num_programs(1)
    c_in, t = x_ref.shape

    x = x_ref[...]                                        # (C, T) f32

    # Folded affine on the VPU: out[co, :] = sum_c w[c, co] * x[c, :] + b[co].
    y0 = x[0:1, :] * w_ref[0, 0] + b_ref[0, 0]            # (1, T)
    y1 = x[0:1, :] * w_ref[0, 1] + b_ref[0, 1]            # (1, T)
    for c in range(1, c_in):                              # C tiny & static: unrolled
        xc = x[c:c + 1, :]
        y0 = y0 + xc * w_ref[c, 0]
        y1 = y1 + xc * w_ref[c, 1]

    seg_ref[...] = jnp.concatenate([y0, y1], axis=0)      # (2, T) lane-dense store

    # Fused seg->class head: running spatial sum of seg channel 1
    # (mask lanes past the true spatial extent for tail tiles).
    lane = jax.lax.broadcasted_iota(jnp.int32, (1, t), 1)
    valid = (j * t + lane) < hw
    part = jnp.sum(jnp.where(valid, y1, 0.0), axis=1, keepdims=True)   # (1, 1)

    @pl.when(j == 0)
    def _():
        cls_ref[...] = jnp.zeros_like(cls_ref)

    cls_ref[...] += part

    @pl.when(j == nj - 1)
    def _():
        # AdaptiveAvgPool2d(1) then Conv2d(1, 1, kernel_size=1, bias=True).
        cls_ref[...] = cls_ref[...] * (s2c_ref[0, 0] / hw) + s2c_ref[0, 1]


# ---------------------------------------------------------------------------
# Wrapper reproducing AlgaeClassifier.forward (fpn_resnet18-style branch).
# ---------------------------------------------------------------------------
def algae_classifier_forward(x_nchw, params, *, prescale=1, lane_tile=65536):
    """x_nchw: (B, C, H, W) f32.  Returns {'class': (B,1,1,1), 'seg': (B,2,H,W)}."""
    B, C, H, W = x_nchw.shape
    if prescale > 1:
        # TODO(synk): bilinear interpolate prescale path not implemented.
        raise NotImplementedError("prescale > 1 not implemented")

    HW = H * W

    # Fold the linear 1x1-conv stack once (tiny) -- one affine in the kernel.
    w_eff = params["cheaplab_w"] @ params["backbone_w"]                         # (C, 2)
    b_eff = params["cheaplab_b"] @ params["backbone_w"] + params["backbone_b"]  # (1, 2)
    s2c = jnp.concatenate(
        [params["s2c_w"].reshape(1, 1), params["s2c_b"].reshape(1, 1)], axis=1)  # (1, 2)

    # Lane-dense spatial tile: multiple of 128, large but VMEM-safe on v5e/v6e/v7x.
    T = min(lane_tile, pl.cdiv(HW, 128) * 128)
    nj = pl.cdiv(HW, T)

    x_r = x_nchw.reshape(B, C, HW)        # zero-cost reshape, no transposes

    grid_spec = pltpu.PrefetchScalarGridSpec(
        num_scalar_prefetch=0,
        grid=(B, nj),
        in_specs=[
            pl.BlockSpec((None, C, T), lambda b, j: (b, 0, j)),
            pl.BlockSpec(memory_space=pltpu.MemorySpace.SMEM),   # w_eff (C, 2)
            pl.BlockSpec(memory_space=pltpu.MemorySpace.SMEM),   # b_eff (1, 2)
            pl.BlockSpec(memory_space=pltpu.MemorySpace.SMEM),   # s2c   (1, 2)
        ],
        out_specs=[
            pl.BlockSpec((None, 2, T), lambda b, j: (b, 0, j)),   # seg tile
            pl.BlockSpec((None, 1, 1), lambda b, j: (b, 0, 0)),   # class accumulator
        ],
    )

    seg_flat, cls = pl.pallas_call(
        functools.partial(_fused_kernel, hw=HW),
        out_shape=(
            jax.ShapeDtypeStruct((B, 2, HW), jnp.float32),
            jax.ShapeDtypeStruct((B, 1, 1), jnp.float32),
        ),
        grid_spec=grid_spec,
        compiler_params=pltpu.CompilerParams(
            dimension_semantics=("parallel", "arbitrary")),
    )(x_r, w_eff, b_eff, s2c)

    seg = seg_flat.reshape(B, 2, H, W)        # already NCHW, no transpose
    cls = cls.reshape(B, 1, 1, 1)
    return {"class": cls, "seg": seg}


def make_params(in_channels):
    """Deterministic synthetic parameters (shapes implied by the module)."""
    k = jax.random.PRNGKey(42)
    k1, k2, k3, k4, k5, k6 = jax.random.split(k, 6)
    return {
        # CheapLab stand-in: 1x1 conv, in_channels -> 3
        "cheaplab_w": jax.random.normal(k1, (in_channels, 3), jnp.float32) * 0.1,
        "cheaplab_b": jax.random.normal(k2, (1, 3), jnp.float32) * 0.1,
        # FPN-ResNet backbone stand-in: 1x1 conv, 3 -> 2 (num_classes=2 seg map)
        "backbone_w": jax.random.normal(k3, (3, 2), jnp.float32) * 0.1,
        "backbone_b": jax.random.normal(k4, (1, 2), jnp.float32) * 0.1,
        # AlgaeSegmentationToClassification conv2d(1,1,kernel_size=1,bias=True)
        "s2c_w": jax.random.normal(k5, (1, 1), jnp.float32),
        "s2c_b": jax.random.normal(k6, (1, 1), jnp.float32),
    }


def reference_forward(x_nchw, params):
    """Plain-JAX reference for the same simplified graph (unfused, two matmuls)."""
    B, C, H, W = x_nchw.shape
    xf = jnp.transpose(x_nchw, (0, 2, 3, 1)).reshape(B * H * W, C)
    h = xf @ params["cheaplab_w"] + params["cheaplab_b"]
    y = h @ params["backbone_w"] + params["backbone_b"]
    seg = jnp.transpose(y.reshape(B, H, W, 2), (0, 3, 1, 2))
    m = jnp.mean(seg[:, 1, :, :], axis=(1, 2)).reshape(B, 1, 1, 1)
    cls = m * params["s2c_w"][0, 0] + params["s2c_b"][0, 0]
    return {"class": cls, "seg": seg}


if __name__ == "__main__":
    B, C, H, W = 2, 4, 16, 16          # small NCHW input, 4-channel imagery
    key = jax.random.PRNGKey(0)
    x = jax.random.normal(key, (B, C, H, W), jnp.float32)

    params = make_params(in_channels=C)

    out = algae_classifier_forward(x, params, prescale=1)
    jax.block_until_ready(out["class"])
    jax.block_until_ready(out["seg"])

    ref = reference_forward(x, params)
    assert out["class"].shape == (B, 1, 1, 1)
    assert out["seg"].shape == (B, 2, H, W)
    assert jnp.allclose(out["seg"], ref["seg"], atol=1e-5, rtol=1e-5)
    assert jnp.allclose(out["class"], ref["class"], atol=1e-5, rtol=1e-5)

    print("KERNEL_OK")
</pallas_src>

<mosaic_0001>
module attributes {stable_mosaic.version = 11 : i64} {
  func.func @_fused_kernel(%arg0: i32, %arg1: i32, %arg2: memref<1x4x256xf32, #tpu.memory_space<vmem>>, %arg3: memref<4x2xf32, #tpu.memory_space<smem>>, %arg4: memref<1x2xf32, #tpu.memory_space<smem>>, %arg5: memref<1x2xf32, #tpu.memory_space<smem>>, %arg6: memref<1x2x256xf32, #tpu.memory_space<vmem>>, %arg7: memref<1x1x1xf32, #tpu.memory_space<vmem>>) attributes {dimension_semantics = [#tpu.dimension_semantics<parallel>, #tpu.dimension_semantics<arbitrary>], iteration_bounds = array<i64: 2, 1>, scalar_prefetch = 0 : i64, scratch_operands = 0 : i64, tpu.core_type = #tpu.core_type<tc>, window_params = [{transform_indices = @transform_0, window_bounds = array<i64: 1, 4, 256>}, {transform_indices = @transform_1, window_bounds = array<i64: 4, 2>}, {transform_indices = @transform_2, window_bounds = array<i64: 1, 2>}, {transform_indices = @transform_3, window_bounds = array<i64: 1, 2>}, {transform_indices = @transform_4, window_bounds = array<i64: 1, 2, 256>}, {transform_indices = @transform_5, window_bounds = array<i64: 1, 1, 1>}]} {
    %c0 = arith.constant 0 : index
    %c0_0 = arith.constant 0 : index
    %c0_1 = arith.constant 0 : index
    %0 = vector.load %arg2[%c0, %c0_0, %c0_1] : memref<1x4x256xf32, #tpu.memory_space<vmem>>, vector<1x4x256xf32>
    %1 = vector.shape_cast %0 : vector<1x4x256xf32> to vector<4x256xf32>
    %2 = vector.extract_strided_slice %1 {offsets = [0, 0], sizes = [1, 256], strides = [1, 1]} : vector<4x256xf32> to vector<1x256xf32>
    %c0_2 = arith.constant 0 : index
    %c0_3 = arith.constant 0 : index
    %3 = memref.load %arg3[%c0_2, %c0_3] : memref<4x2xf32, #tpu.memory_space<smem>>
    %4 = vector.broadcast %3 : f32 to vector<1x256xf32>
    %5 = arith.mulf %2, %4 : vector<1x256xf32>
    %c0_4 = arith.constant 0 : index
    %c0_5 = arith.constant 0 : index
    %6 = memref.load %arg4[%c0_4, %c0_5] : memref<1x2xf32, #tpu.memory_space<smem>>
    %7 = vector.broadcast %6 : f32 to vector<1x256xf32>
    %8 = arith.addf %5, %7 : vector<1x256xf32>
    %9 = vector.extract_strided_slice %1 {offsets = [0, 0], sizes = [1, 256], strides = [1, 1]} : vector<4x256xf32> to vector<1x256xf32>
    %c0_6 = arith.constant 0 : index
    %c1 = arith.constant 1 : index
    %10 = memref.load %arg3[%c0_6, %c1] : memref<4x2xf32, #tpu.memory_space<smem>>
    %11 = vector.broadcast %10 : f32 to vector<1x256xf32>
    %12 = arith.mulf %9, %11 : vector<1x256xf32>
    %c0_7 = arith.constant 0 : index
    %c1_8 = arith.constant 1 : index
    %13 = memref.load %arg4[%c0_7, %c1_8] : memref<1x2xf32, #tpu.memory_space<smem>>
    %14 = vector.broadcast %13 : f32 to vector<1x256xf32>
    %15 = arith.addf %12, %14 : vector<1x256xf32>
    %16 = vector.extract_strided_slice %1 {offsets = [1, 0], sizes = [1, 256], strides = [1, 1]} : vector<4x256xf32> to vector<1x256xf32>
    %c1_9 = arith.constant 1 : index
    %c0_10 = arith.constant 0 : index
    %17 = memref.load %arg3[%c1_9, %c0_10] : memref<4x2xf32, #tpu.memory_space<smem>>
    %18 = vector.broadcast %17 : f32 to vector<1x256xf32>
    %19 = arith.mulf %16, %18 : vector<1x256xf32>
    %20 = arith.addf %8, %19 : vector<1x256xf32>
    %c1_11 = arith.constant 1 : index
    %c1_12 = arith.constant 1 : index
    %21 = memref.load %arg3[%c1_11, %c1_12] : memref<4x2xf32, #tpu.memory_space<smem>>
    %22 = vector.broadcast %21 : f32 to vector<1x256xf32>
    %23 = arith.mulf %16, %22 : vector<1x256xf32>
    %24 = arith.addf %15, %23 : vector<1x256xf32>
    %25 = vector.extract_strided_slice %1 {offsets = [2, 0], sizes = [1, 256], strides = [1, 1]} : vector<4x256xf32> to vector<1x256xf32>
    %c2 = arith.constant 2 : index
    %c0_13 = arith.constant 0 : index
    %26 = memref.load %arg3[%c2, %c0_13] : memref<4x2xf32, #tpu.memory_space<smem>>
    %27 = vector.broadcast %26 : f32 to vector<1x256xf32>
    %28 = arith.mulf %25, %27 : vector<1x256xf32>
    %29 = arith.addf %20, %28 : vector<1x256xf32>
    %c2_14 = arith.constant 2 : index
    %c1_15 = arith.constant 1 : index
    %30 = memref.load %arg3[%c2_14, %c1_15] : memref<4x2xf32, #tpu.memory_space<smem>>
    %31 = vector.broadcast %30 : f32 to vector<1x256xf32>
    %32 = arith.mulf %25, %31 : vector<1x256xf32>
    %33 = arith.addf %24, %32 : vector<1x256xf32>
    %34 = vector.extract_strided_slice %1 {offsets = [3, 0], sizes = [1, 256], strides = [1, 1]} : vector<4x256xf32> to vector<1x256xf32>
    %c3 = arith.constant 3 : index
    %c0_16 = arith.constant 0 : index
    %35 = memref.load %arg3[%c3, %c0_16] : memref<4x2xf32, #tpu.memory_space<smem>>
    %36 = vector.broadcast %35 : f32 to vector<1x256xf32>
    %37 = arith.mulf %34, %36 : vector<1x256xf32>
    %38 = arith.addf %29, %37 : vector<1x256xf32>
    %c3_17 = arith.constant 3 : index
    %c1_18 = arith.constant 1 : index
    %39 = memref.load %arg3[%c3_17, %c1_18] : memref<4x2xf32, #tpu.memory_space<smem>>
    %40 = vector.broadcast %39 : f32 to vector<1x256xf32>
    %41 = arith.mulf %34, %40 : vector<1x256xf32>
    %42 = arith.addf %33, %41 : vector<1x256xf32>
    %43 = tpu.concatenate %38, %42 in 0 : vector<1x256xf32>, vector<1x256xf32> -> vector<2x256xf32>
    %c0_19 = arith.constant 0 : index
    %c0_20 = arith.constant 0 : index
    %c0_21 = arith.constant 0 : index
    %44 = vector.load %arg6[%c0_19, %c0_20, %c0_21] : memref<1x2x256xf32, #tpu.memory_space<vmem>>, vector<1x2x256xf32>
    %45 = vector.shape_cast %44 : vector<1x2x256xf32> to vector<2x256xf32>
    %46 = vector.shape_cast %43 : vector<2x256xf32> to vector<1x2x256xf32>
    tpu.vector_store %arg6[%c0_19, %c0_20, %c0_21], %46 {strides = array<i32>} : memref<1x2x256xf32, #tpu.memory_space<vmem>>, vector<1x2x256xf32>,
    %47 = tpu.iota {dimensions = array<i32: 1>} : vector<1x256xi32>
    %c256_i32 = arith.constant 256 : i32
    %48 = arith.muli %arg1, %c256_i32 : i32
    %49 = vector.broadcast %48 : i32 to vector<1x256xi32>
    %50 = arith.addi %49, %47 : vector<1x256xi32>
    %c256_i32_22 = arith.constant 256 : i32
    %51 = vector.broadcast %c256_i32_22 : i32 to vector<1x256xi32>
    %52 = arith.cmpi slt, %50, %51 : vector<1x256xi32>
    %cst = arith.constant 0.000000e+00 : f32
    %53 = vector.broadcast %cst : f32 to vector<1x256xf32>
    %54 = arith.select %52, %42, %53 : vector<1x256xi1>, vector<1x256xf32>
    %cst_23 = arith.constant dense<0.000000e+00> : vector<1xf32>
    %55 = vector.multi_reduction <add>, %54, %cst_23 [1] : vector<1x256xf32> to vector<1xf32>
    %56 = vector.shape_cast %55 : vector<1xf32> to vector<1x1xf32>
    %c0_i32 = arith.constant 0 : i32
    %57 = arith.cmpi eq, %arg1, %c0_i32 : i32
    %58 = arith.extui %57 : i1 to i32
    %c0_i32_24 = arith.constant 0 : i32
    %59 = arith.cmpi ne, %58, %c0_i32_24 : i32
    scf.if %59 {
      %cst_33 = arith.constant 0.000000e+00 : f32
      %69 = vector.broadcast %cst_33 : f32 to vector<1x1xf32>
      %c0_34 = arith.constant 0 : index
      %c0_35 = arith.constant 0 : index
      %c0_36 = arith.constant 0 : index
      %70 = vector.load %arg7[%c0_34, %c0_35, %c0_36] : memref<1x1x1xf32, #tpu.memory_space<vmem>>, vector<1x1x1xf32>
      %71 = vector.shape_cast %70 : vector<1x1x1xf32> to vector<1x1xf32>
      %72 = vector.shape_cast %69 : vector<1x1xf32> to vector<1x1x1xf32>
      tpu.vector_store %arg7[%c0_34, %c0_35, %c0_36], %72 {strides = array<i32>} : memref<1x1x1xf32, #tpu.memory_space<vmem>>, vector<1x1x1xf32>,
    } else {
    }
    %c0_25 = arith.constant 0 : index
    %c0_26 = arith.constant 0 : index
    %c0_27 = arith.constant 0 : index
    %60 = vector.load %arg7[%c0_25, %c0_26, %c0_27] : memref<1x1x1xf32, #tpu.memory_space<vmem>>, vector<1x1x1xf32>
    %61 = vector.shape_cast %60 : vector<1x1x1xf32> to vector<1x1xf32>
    %62 = arith.addf %61, %56 : vector<1x1xf32>
    %c0_28 = arith.constant 0 : index
    %c0_29 = arith.constant 0 : index
    %c0_30 = arith.constant 0 : index
    %63 = vector.load %arg7[%c0_28, %c0_29, %c0_30] : memref<1x1x1xf32, #tpu.memory_space<vmem>>, vector<1x1x1xf32>
    %64 = vector.shape_cast %63 : vector<1x1x1xf32> to vector<1x1xf32>
    %65 = vector.shape_cast %62 : vector<1x1xf32> to vector<1x1x1xf32>
    tpu.vector_store %arg7[%c0_28, %c0_29, %c0_30], %65 {strides = array<i32>} : memref<1x1x1xf32, #tpu.memory_space<vmem>>, vector<1x1x1xf32>,
    %c0_i32_31 = arith.constant 0 : i32
    %66 = arith.cmpi eq, %arg1, %c0_i32_31 : i32
    %67 = arith.extui %66 : i1 to i32
    %c0_i32_32 = arith.constant 0 : i32
    %68 = arith.cmpi ne, %67, %c0_i32_32 : i32
    scf.if %68 {
      %c0_33 = arith.constant 0 : index
      %c0_34 = arith.constant 0 : index
      %c0_35 = arith.constant 0 : index
      %69 = vector.load %arg7[%c0_33, %c0_34, %c0_35] : memref<1x1x1xf32, #tpu.memory_space<vmem>>, vector<1x1x1xf32>
      %70 = vector.shape_cast %69 : vector<1x1x1xf32> to vector<1x1xf32>
      %c0_36 = arith.constant 0 : index
      %c0_37 = arith.constant 0 : index
      %71 = memref.load %arg5[%c0_36, %c0_37] : memref<1x2xf32, #tpu.memory_space<smem>>
      %cst_38 = arith.constant 2.560000e+02 : f32
      %72 = arith.divf %71, %cst_38 : f32
      %73 = vector.broadcast %72 : f32 to vector<1x1xf32>
      %74 = arith.mulf %70, %73 : vector<1x1xf32>
      %c0_39 = arith.constant 0 : index
      %c1_40 = arith.constant 1 : index
      %75 = memref.load %arg5[%c0_39, %c1_40] : memref<1x2xf32, #tpu.memory_space<smem>>
      %76 = vector.broadcast %75 : f32 to vector<1x1xf32>
      %77 = arith.addf %74, %76 : vector<1x1xf32>
      %c0_41 = arith.constant 0 : index
      %c0_42 = arith.constant 0 : index
      %c0_43 = arith.constant 0 : index
      %78 = vector.load %arg7[%c0_41, %c0_42, %c0_43] : memref<1x1x1xf32, #tpu.memory_space<vmem>>, vector<1x1x1xf32>
      %79 = vector.shape_cast %78 : vector<1x1x1xf32> to vector<1x1xf32>
      %80 = vector.shape_cast %77 : vector<1x1xf32> to vector<1x1x1xf32>
      tpu.vector_store %arg7[%c0_41, %c0_42, %c0_43], %80 {strides = array<i32>} : memref<1x1x1xf32, #tpu.memory_space<vmem>>, vector<1x1x1xf32>,
    } else {
    }
    return
  }
  func.func @transform_0(%arg0: i32, %arg1: i32) -> (i32, i32, i32) {
    %c0_i32 = arith.constant 0 : i32
    %c0_i32_0 = arith.constant 0 : i32
    return %arg0, %c0_i32, %arg1 : i32, i32, i32
  }
  func.func @transform_1(%arg0: i32, %arg1: i32) -> (i32, i32) {
    %c0_i32 = arith.constant 0 : i32
    %c0_i32_0 = arith.constant 0 : i32
    %c0_i32_1 = arith.constant 0 : i32
    return %c0_i32, %c0_i32_0 : i32, i32
  }
  func.func @transform_2(%arg0: i32, %arg1: i32) -> (i32, i32) {
    %c0_i32 = arith.constant 0 : i32
    %c0_i32_0 = arith.constant 0 : i32
    %c0_i32_1 = arith.constant 0 : i32
    return %c0_i32, %c0_i32_0 : i32, i32
  }
  func.func @transform_3(%arg0: i32, %arg1: i32) -> (i32, i32) {
    %c0_i32 = arith.constant 0 : i32
    %c0_i32_0 = arith.constant 0 : i32
    %c0_i32_1 = arith.constant 0 : i32
    return %c0_i32, %c0_i32_0 : i32, i32
  }
  func.func @transform_4(%arg0: i32, %arg1: i32) -> (i32, i32, i32) {
    %c0_i32 = arith.constant 0 : i32
    %c0_i32_0 = arith.constant 0 : i32
    return %arg0, %c0_i32, %arg1 : i32, i32, i32
  }
  func.func @transform_5(%arg0: i32, %arg1: i32) -> (i32, i32, i32) {
    %c0_i32 = arith.constant 0 : i32
    %c0_i32_0 = arith.constant 0 : i32
    %c0_i32_1 = arith.constant 0 : i32
    return %arg0, %c0_i32, %c0_i32_0 : i32, i32, i32
  }
}

</mosaic_0001>

<bundles_post_ra>
// kernel: tpu_custom_call.1
= control target key start
LH: loop header
LB: loop body
LE: loop exit
PB: predicated region body
PF: predicated region fallthrough
CT: control target
= control target key end

     0   :  { %11 = vsyncpa [#allocation3], 0  ;;  %s1185_s0 = inlined_call_operand.hbm [shape: f32[2,4,256], index: 0, kind: input, shape index: {}]   ;;  %s1186_s1 = inlined_call_operand.vmem [shape: f32[4,2], index: 1, kind: input, shape index: {}]   ;;  %s1187_s2 = inlined_call_operand.vmem [shape: f32[1,2], index: 2, kind: input, shape index: {}]   ;;  %s1188_s3 = inlined_call_operand.vmem [shape: f32[1,2], index: 3, kind: input, shape index: {}]   ;;  %s1189_s4 = inlined_call_operand.hbm [shape: f32[2,2,256], index: 4, kind: output, shape index: {0}]   ;;  %s1190_s5 = inlined_call_operand.vmem [shape: f32[2,1,1], index: 5, kind: output, shape index: {1}]  }
   0x1   :  { %13 = vsyncpa [#allocation3 + $0x1], 0 }
   0x2   :  { %14 = vsyncpa [#allocation5], 0 }
   0x3   :  { %15 = vsyncpa [#allocation8], 0 }
   0x4   :  { %16 = vsyncpa [#allocation4], 0 }
   0x5   :  { %18 = vsyncpa [#allocation4 + $0x1], 0  ;;  %s940_s18 = smov 0   ;;  %s942_s19 = smov 0  }
   0x6   :  { %s944_s20 = smov 0   ;;  %s946_s21 = smov 0  }
   0x7   :  { %s948_s22 = smov 0   ;;  %s950_s23 = smov 0  }
   0x8 LB: > { %s604_s24 = sadd.s32 4294967295, %s902_s23   ;;  %s605_s25 = sadd.s32 4294967294, %s902_s23   ;;  %s902_s23 = sphi %s950_s23, %s24_s23   ;;  %s898_s22 = sphi %s948_s22, %s1213_s22   ;;  %s894_s21 = sphi %s946_s21, %s1212_s21   ;;  %s890_s20 = sphi %s944_s20, %s1211_s20   ;;  %s886_s19 = sphi %s942_s19, %s1210_s19   ;;  %s882_s18 = sphi %s940_s18, %s1209_s18  }
   0x9   : > { %p58_p0 = scmp.ne.s32.totalorder %s886_s19, %s882_s18  ;;  %p974_p1 = scmp.eq.s32.totalorder %s604_s24, 0 }
   0xa   : > { %p978_p2 = scmp.eq.s32.totalorder %s604_s24, 1  ;;  %p153_p3 = scmp.eq.s32.totalorder %s605_s25, 1 }
   0xb   : > { %s1195_s26 = scalar_select %p974_p1, 1, 0 }
   0xc   : > { %s1196_s27 = scalar_select %p978_p2, 1, 0 }
   0xd   : > { %p984_p4 = por %p974_p1, %p58_p0  ;;  %p606_p5 = scmp.ge.s32.totalorder %s902_s23, 1 }
   0xe   : > { %p989_p6 = por %p153_p3, %p58_p0  ;;  %p186_p7 = scmp.lt.s32.totalorder %s902_s23, 3 }
   0xf   : > { %s1197_s28 = scalar_select %p984_p4, 1, 0 }
  0x10   : > { %s1198_s29 = scalar_select %p989_p6, 1, 0 }
  0x11   : > { %s210_s7 = sshll.u32 %s1187_s2, 4  ;;  %p997_p8 = pnand %p606_p5, %p186_p7  ;;  %s211_s7 = int_to_ptr.vmem [resolvable:$true] %s210_s7 }
  0x12   : > { %s199_s11 = sshll.u32 %s1186_s1, 4  ;;  %s221_s15 = sshll.u32 %s1188_s3, 4  ;;  %s200_s11 = int_to_ptr.vmem [resolvable:$true] %s199_s11  ;;  %s1016_s15 = int_to_ptr.vmem [resolvable:$true] %s221_s15 }
  0x13   : > { %s1199_s8 = scalar_select %p997_p8, 1, 0 }
  0x14   : > { %p659_p10 = pneg %p997_p8  ;;  %s737_s16 = scalar_lea.vmem %s211_s7, 16 }
  0x15   : > { %p738_p12 = scmp.ne.s32.totalorder %s211_s7, %s737_s16  ;;  %p745_p5 = scmp.lt.s32.totalorder %s211_s7, %s211_s7 }
  0x16   : > { %p1009_p11 = pnand %p659_p10, %p974_p1  ;;  %p746_p7 = scmp.lt.s32.totalorder %s737_s16, %s737_s16 }
  0x18   : > { %p739_p13 = pneg %p1009_p11  ;;  %p747_p10 = por %p746_p7, %p745_p5 }
  0x1a   : > { %p740_p0 = pnand %p739_p13, %p738_p12 }
  0x1c   : > { %p741_p3 = pneg %p740_p0 }
  0x1e   : > { %p748_p9 = pnand %p747_p10, %p741_p3 }
  0x20   : > { %751 = shalt.err (!%p748_p9)
}
  0x21   : > { %s904_s17 = smov [#allocation7]   ;;  %s752_s24 = scalar_lea.vmem %s200_s11, 64 }
  0x22   : > { %665 = dma.vmem_to_smem (!%p1009_p11), %s211_s7, 16, %s904_s17, [#allocation8]  }
  0x23   : > { %p753_p6 = scmp.ne.s32.totalorder %s200_s11, %s752_s24  ;;  %p760_p8 = scmp.lt.s32.totalorder %s200_s11, %s200_s11 }
  0x24   : > { %p761_p2 = scmp.lt.s32.totalorder %s752_s24, %s752_s24 }
  0x25   : > { %p755_p1 = pnand %p753_p6, %p739_p13 }
  0x26   : > { %p762_p12 = por %p761_p2, %p760_p8 }
  0x27   : > { %p756_p4 = pneg %p755_p1 }
  0x29   : > { %p763_p0 = pnand %p762_p12, %p756_p4 }
  0x2b   : > { %766 = shalt.err (!%p763_p0)
}
  0x2c   : > { %s905_s25 = smov [#allocation6]   ;;  %s767_s30 = scalar_lea.vmem %s1016_s15, 16 }
  0x2d   : > { %662 = dma.vmem_to_smem (!%p1009_p11), %s200_s11, 64, %s905_s25, [#allocation5]  }
  0x2e   : > { %p768_p9 = scmp.ne.s32.totalorder %s1016_s15, %s767_s30  ;;  %p775_p1 = scmp.lt.s32.totalorder %s1016_s15, %s1016_s15 }
  0x2f   : > { %p776_p5 = scmp.lt.s32.totalorder %s767_s30, %s767_s30 }
  0x30   : > { %p770_p3 = pnand %p768_p9, %p739_p13 }
  0x31   : > { %p777_p2 = por %p776_p5, %p775_p1 }
  0x32   : > { %p771_p6 = pneg %p770_p3 }
  0x34   : > { %p778_p4 = pnand %p777_p2, %p771_p6 }
  0x36   : > { %781 = shalt.err (!%p778_p4)
}
  0x37   : > { %s906_s6 = smov [#allocation9]   ;;  %s45_s7 = sadd.s32 1, %s890_s20 }
  0x38   : > { %668 = dma.vmem_to_smem (!%p1009_p11), %s1016_s15, 16, %s906_s6, [#allocation8]  }
  0x39   : > { %s36_s9 = sadd.s32 1, %s898_s22  ;;  %p52_p8 = scmp.ne.s32.totalorder %s890_s20, %s886_s19 }
  0x3a   : > { %p38_p13 = scmp.ge.s32.totalorder %s36_s9, 2  ;;  %p53_p7 = scmp.eq.s32.totalorder %s902_s23, 0 }
  0x3b   : > { %p1201_p10 = scmp.ne.s32.totalorder %s1196_s27, 0  ;;  %p680_p0 = scmp.lt.s32.totalorder %s902_s23, 2 }
  0x3c   : > { %s1215_s9 = smov (%p38_p13, %s36_s9), 0  ;;  %p54_p9 = por %p53_p7, %p52_p8 }
  0x3d   : > { %p1047_p12 = por %p1201_p10, %p52_p8  ;;  %s232_s11 = sand.u32 1, %s890_s20  }
  0x3e   : > { %s40_s12 = ssub.s32 %s898_s22, %s1215_s9  ;;  %s611_s13 = sshll.u32 %s232_s11, 3 }
  0x3f   : > { %p43_p3 = scmp.eq.s32.totalorder %s40_s12, 0  ;;  %s641_s14 = sshll.u32 %s898_s22, 7 }
  0x40   : > { %s1064_s27 = scalar_lea.hbm %s1185_s0, %s641_s14  ;;  %s236_s24 = scalar_lea.vmem [#allocation2], %s611_s13 }
  0x41   : > { %s1059_s15 = scalar_select %p43_p3, %s890_s20, %s45_s7  }
  0x42   : > { %s246_s25 = sshll.u32 %s236_s24, 4  ;;  %p1070_p11 = pnand %p680_p0, %p54_p9  ;;  %s1066_s25 = int_to_ptr.vmem [resolvable:$true] %s246_s25 }
  0x43   : > { %s233_s6 = scalar_lea.sflag [#allocation3], %s232_s11  ;;  %s782_s7 = scalar_lea.hbm %s1064_s27, 128 }
  0x44   : > { %p783_p6 = scmp.ne.s32.totalorder %s1064_s27, %s782_s7  ;;  %p784_p1 = pneg %p1070_p11 }
  0x45   : > { %s787_s14 = scalar_lea.hbm %s1185_s0, 256  ;;  %p788_p4 = scmp.lt.u32.totalorder %s1064_s27, %s1185_s0 }
  0x46   : > { %p785_p5 = pnand %p784_p1, %p783_p6  ;;  %p789_p8 = scmp.lt.u32.totalorder %s787_s14, %s782_s7 }
  0x47   : > { %p791_p7 = scmp.lt.u32.totalorder %s782_s7, %s1064_s27 }
  0x48   : > { %p786_p2 = pneg %p785_p5  ;;  %p790_p13 = por %p789_p8, %p788_p4 }
  0x4a   : > { %p792_p10 = por %p791_p7, %p790_p13 }
  0x4c   : > { %p793_p0 = pnand %p792_p10, %p786_p2 }
  0x4e   : > { %796 = shalt.err (!%p793_p0)
}
  0x4f   : > { %s797_s11 = scalar_lea.vmem %s1066_s25, 128  ;;  %s907_s24 = smov [#allocation2]  }
  0x50   : > { %p798_p9 = scmp.ne.s32.totalorder %s1066_s25, %s797_s11  ;;  %s802_s12 = sshll.u32 %s907_s24, 4  ;;  %s803_s12 = int_to_ptr.vmem [resolvable:$false] %s802_s12 }
  0x51   : > { %s804_s13 = scalar_lea.vmem %s803_s12, 256  ;;  %p805_p5 = scmp.lt.s32.totalorder %s1066_s25, %s803_s12 }
  0x52   : > { %p800_p3 = pnand %p798_p9, %p784_p1  ;;  %p806_p4 = scmp.lt.s32.totalorder %s804_s13, %s797_s11 }
  0x54   : > { %p801_p6 = pneg %p800_p3  ;;  %p807_p8 = por %p806_p4, %p805_p5 }
  0x56   : > { %p808_p13 = pnand %p807_p8, %p801_p6 }
  0x58   : > { %811 = shalt.err (!%p808_p13)
}
  0x59   : > { %672 = dma.hbm_to_vmem [thread:$0]  (!%p1070_p11), %s1064_s27, 128, %s1066_s25, %s233_s6  }
  0x5a   : > { %p1204_p2 = scmp.ne.s32.totalorder %s1199_s8, 0 }
  0x5b   : > { %s1102_s7 = sand.u32 (!%p1204_p2), 1, %s886_s19   ;;  %p1205_p1 = scmp.ne.s32.totalorder (!%p1204_p2), %s1197_s28, 0 }
  0x5c   : > { %255 = sbr.rel (%p1204_p2) target bundleno = 288 (0x120), region = 36  ;;  %s615_s14 = sshll.u32 (!%p1204_p2), %s1102_s7, 3 }
  0x5d   : > { %s258_s16 = scalar_lea.sflag (!%p1204_p2), [#allocation3], %s1102_s7  ;;  %s261_s17 = scalar_lea.vmem (!%p1204_p2), [#allocation2], %s615_s14 }
  0x63   : > { %865 = dma.done.wait (%p1205_p1), %s258_s16, 128  }
  0x64   : > { %867 = vsyncadd (%p1205_p1), %s258_s16, 4294967168  ;;  %p1206_p7 = scmp.ne.s32.totalorder %s1195_s26, 0 }
  0x66   : > { %869 = dma.done.wait (%p1206_p7), [#allocation5], 64  }
  0x67   : > { %871 = vsyncadd (%p1206_p7), [#allocation5], 4294967232 }
  0x68   : > { %873 = dma.done.wait (%p1206_p7), [#allocation8], 32  }
  0x69   : > { %875 = vsyncadd (%p1206_p7), [#allocation8], 4294967264 }
  0x6a   : > { %278 = sfence }
  0x6b   : > { %s620_s8 = sld [smem:[#allocation6 + $0x1]]  ;;  %v309_v0 = vld [vmem:[%s261_s17] sm:$0xff]  ;;  %v371_v5 = vlaneseq  ;;  %s310_s26 = sld [smem:[#allocation6]]  ;;  %vm392_vm0 = vcmask 1040384   ;;  %vm427_vm1 = vcmask 0   ;;  %v908_v36 = vmov 0.0  }
  0x6c   : > { %s621_s27 = sld [smem:[#allocation7 + $0x1]]  ;;  %s622_s28 = sld [smem:[#allocation6 + $0x80]] }
  0x6d   : > { %s624_s25 = sld [smem:[#allocation6 + $0x81]]  ;;  %v372_v12 = vshrl.u32 %v371_v5, 7  ;;  %s313_s11 = sld [smem:[#allocation7]] }
  0x6e   : > { %s628_s30 = sld [smem:[#allocation6 + $0x101]]  ;;  %s626_s24 = sld [smem:[#allocation6 + $0x100]] }
  0x6f   : > { %s632_s6 = sld [smem:[#allocation6 + $0x181]]  ;;  %v373_v18 = vsub.s32 0, %v372_v12  ;;  %v377_v19 = vsub.s32 4, %v372_v12  ;;  %p306_p11 = scmp.lt.s32.totalorder %s894_s21, 1 }
  0x70   : > { %s630_s12 = sld [smem:[#allocation6 + $0x180]] }
  0x71   : > { %v317_v1 = vstv %s620_s8  ;;  %v311_v23 = vstv %s310_s26  ;;  %s307_s13 = scalar_select %p306_p11, %s894_s21, 1 }
  0x72   : > { %v320_v2 = vstv %s621_s27  ;;  %v318_v3 = vmul.f32 %v317_v1, %v309_v0  ;;  %v323_v24 = vstv %s622_s28  ;;  %v312_v28 = vmul.f32 %v311_v23, %v309_v0  ;;  %s619_s8 = sshll.u32 %s1102_s7, 2  ;;  %s642_s27 = sshll.u32 %s894_s21, 6 }
  0x73   : > { %v331_v4 = vstv %s624_s25  ;;  %v324_v29 = vmul.f32 %v323_v24, %v309_v0  ;;  %v314_v30 = vstv %s313_s11  ;;  %s1125_s17 = scalar_lea.vmem %s1190_s5, %s307_s13  ;;  %s298_s25 = scalar_lea.vmem [#allocation10], %s619_s8 }
  0x74   : > { %v332_v6 = vmul.f32 %v331_v4, %v309_v0  ;;  %v321_v7 = vadd.f32 %v320_v2, %v318_v3  ;;  %v347_v8 = vstv %s628_s30  ;;  %v339_v31 = vstv %s626_s24  ;;  %428 = vst.msk [vmem:[%s1125_s17] sm:$0x1] %vm427_vm1, %v908_v36  ;;  %s467_s30 = sshll.u32 %s298_s25, 4  ;;  %s1136_s28 = scalar_lea.hbm %s1189_s4, %s642_s27  ;;  %s468_s30 = int_to_ptr.vmem [resolvable:$true] %s467_s30 }
  0x75   : > { %v348_v10 = vmul.f32 %v347_v8, %v309_v0  ;;  %v363_v11 = vstv %s632_s6  ;;  %v315_v32 = vadd.f32 %v314_v30, %v312_v28  ;;  %v623_v33 = vrot.slane %v324_v29, 9  ;;  %s448_s11 = scalar_lea.sflag [#allocation4], %s1102_s7  ;;  %s812_s24 = scalar_lea.vmem %s468_s30, 64 }
  0x76   : > { %v625_v9 = vrot.slane %v332_v6, 9  ;;  %v364_v15 = vmul.f32 %v363_v11, %v309_v0  ;;  %v340_v34 = vmul.f32 %v339_v31, %v309_v0  ;;  %v355_v35 = vstv %s630_s12  ;;  %p813_p10 = scmp.ne.s32.totalorder %s468_s30, %s812_s24  ;;  %s909_s12 = smov [#allocation10]  }
  0x77   : > { %v629_v14 = vrot.slane %v348_v10, 10  ;;  %v329_v37 = vadd.f32 %v623_v33, %v315_v32  ;;  %v356_v39 = vmul.f32 %v355_v35, %v309_v0  ;;  %s816_s13 = sshll.u32 %s909_s12, 4  ;;  %s817_s13 = int_to_ptr.vmem [resolvable:$false] %s816_s13 }
  0x78   : > { %v337_v13 = vadd.f32 %v625_v9, %v321_v7  ;;  %v633_v17 = vrot.slane %v364_v15, 11  ;;  %v627_v38 = vrot.slane %v340_v34, 10  ;;  %p814_p0 = pnand %p813_p10, %p1047_p12  ;;  %s818_s14 = scalar_lea.vmem %s817_s13, 128 }
  0x79   : > { %v631_v41 = vrot.slane %v356_v39, 11  ;;  %p819_p3 = scmp.lt.s32.totalorder %s468_s30, %s817_s13  ;;  %p820_p6 = scmp.lt.s32.totalorder %s818_s14, %s812_s24 }
  0x7a   : > { %v353_v16 = vadd.f32 %v629_v14, %v337_v13  ;;  %v345_v40 = vadd.f32 %v627_v38, %v329_v37  ;;  %p815_p9 = pneg %p814_p0 }
  0x7b   : > { %p821_p5 = por %p820_p6, %p819_p3 }
  0x7c   : > { %v369_v20 = vadd.f32 %v633_v17, %v353_v16  ;;  %v361_v42 = vadd.f32 %v631_v41, %v345_v40 }
  0x7d   : > { %p822_p4 = pnand %p821_p5, %p815_p9 }
  0x7e   : > { %v385_v21 = vrot.slane %v369_v20, %v373_v18  ;;  %v389_v22 = vrot.slane %v369_v20, %v377_v19  ;;  %v374_v43 = vrot.slane %v361_v42, %v373_v18  ;;  %v378_v44 = vrot.slane %v361_v42, %v377_v19 }
  0x80   : > { %v418_v25 = vsel %vm392_vm0, %v385_v21, 0.0  ;;  %v419_v26 = vsel %vm392_vm0, %v389_v22, 0.0  ;;  %v393_v45 = vsel %vm392_vm0, %v374_v43, %v385_v21  ;;  %v394_v46 = vsel %vm392_vm0, %v378_v44, %v389_v22 }
  0x81   : > { %v420_v27 = vadd.f32 %v419_v26, %v418_v25  ;;  %v397_v47 = vcombine.low %v393_v45, %v394_v46 }
  0x83   : > { %421 = vadd.xlane.f32.xlu0 %v420_v27  ;;  %634 = vst.sshfl [vmem:[%s298_s25] sm:$0x33 pattern:$0x76325410] %v397_v47 }
  0x84   : > { %825 = shalt.err (!%p822_p4)
}
  0x85   : > { %s826_s21 = scalar_lea.hbm %s1136_s28, 64  ;;  %s830_s8 = scalar_lea.hbm %s1189_s4, 128 }
  0x86   : > { %p827_p8 = scmp.ne.s32.totalorder %s1136_s28, %s826_s21  ;;  %p831_p1 = scmp.lt.u32.totalorder %s1136_s28, %s1189_s4 }
  0x87   : > { %p832_p7 = scmp.lt.u32.totalorder %s830_s8, %s826_s21  ;;  %p834_p10 = scmp.lt.u32.totalorder %s826_s21, %s1136_s28 }
  0x88   : > { %p828_p13 = pnand %p827_p8, %p1047_p12 }
  0x89   : > { %p833_p11 = por %p832_p7, %p831_p1 }
  0x8a   : > { %p829_p2 = pneg %p828_p13 }
  0x8b   : > { %p835_p0 = por %p834_p10, %p833_p11 }
  0x8d   : > { %p836_p9 = pnand %p835_p0, %p829_p2 }
  0x8f   : > { %839 = shalt.err (!%p836_p9)
}
  0x90   : > { %657 = dma.vmem_to_hbm [thread:$0]  (%p1047_p12), %s468_s30, 64, %s1136_s28, %s448_s11   ;;  %v429_v48 = vld [vmem:[%s1125_s17] sm:$0x1] }
  0x91   : > { %s437_s6 = sld [smem:[#allocation9]]  ;;  %s635_s26 = sld [smem:[#allocation9 + $0x1]] }
  0x97   : > { %s440_s24 = smul.f32 0.00390625, %s437_s6  ;;  %v444_v53 = vstv %s635_s26 }
  0x99   : > { %v441_v51 = vstv %s440_s24 }
 0x110   : > { %v422_v49 = vpop.xlane.xlu0 %421 }
 0x111   : > { %v430_v50 = vadd.f32 %v429_v48, %v422_v49 }
 0x113   : > { %432 = vst.msk [vmem:[%s1125_s17] sm:$0x1] %vm427_vm1, %v430_v50 }
 0x11a   : > { %v436_v52 = vld [vmem:[%s1125_s17] sm:$0x1] }
 0x11b   : > { %v442_v54 = vmul.f32 %v441_v51, %v436_v52 }
 0x11d   : > { %v445_v55 = vadd.f32 %v444_v53, %v442_v54 }
 0x11f   : > { %446 = vst.msk [vmem:[%s1125_s17] sm:$0x1] %vm427_vm1, %v445_v55 }
 0x120 PF: > { %s482_s10 = sand.u32 1, %s882_s18   ;;  %p1207_p12 = scmp.ne.s32.totalorder %s1198_s29, 0 }
 0x121   : > { %p1208_p3 = scmp.ge.s32.totalorder %s902_s23, 2  ;;  %s483_s30 = scalar_lea.sflag [#allocation4], %s482_s10 }
 0x123   : > { %p674_p6 = pnand %p1208_p3, %p1207_p12 }
 0x125   : > { %877 = dma.done.wait (!%p674_p6), %s483_s30, 64  }
 0x126   : > { %879 = vsyncadd (!%p674_p6), %s483_s30, 4294967232  ;;  %s24_s23 = sadd.s32 1, %s902_s23   ;;  %s1209_s18 = smov %s886_s19 }
 0x127   : > { %p21_p5 = scmp.ge.s32.totalorder %s24_s23, 4   ;;  %s1210_s19 = smov %s890_s20 }
 0x128   : > { %s1211_s20 = smov %s1059_s15  ;;  %s1212_s21 = smov %s898_s22 }
 0x129   : > { %s1213_s22 = smov %s1215_s9  ;;  %23 = sbr.rel (!%p21_p5) target bundleno = 8 (0x8), region = 114 }
 0x130   :  { %494 = vsyncpa [#allocation3], 1 }
 0x131   :  { %496 = vsyncpa [#allocation3 + $0x1], 1 }
 0x132   :  { %497 = vsyncpa [#allocation4], 1 }
 0x133   :  { %499 = vsyncpa [#allocation4 + $0x1], 1 }
 0x134   :  { %500 = vsyncpa [#allocation5], 1 }
 0x135   :  { %502 = vsyncpa [#allocation5 + $0x1], 1 }
 0x136   :  { %503 = vsyncpa [#allocation8], 1 }

</bundles_post_ra>
